<compile_context>
chip_gen: v5e
topology: v5e:2x2
jax: 0.10.0
libtpu: 0.0.40
codegen_flags: <defaults>
</compile_context>

<pallas_src>
import functools
import math

import jax
import jax.numpy as jnp
from jax.experimental import pallas as pl
from jax.experimental.pallas import tpu as pltpu

_NEG_BIG = -1e30                 # large finite "masked" value; no -inf -> no NaN
_VMEM_LIMIT = 32 * 1024 * 1024   # fits v5e/v6e/v7x scoped VMEM budgets


def _pick_tile(dim, cap, align):
    """Largest tile <= cap that divides dim and is a multiple of `align`.

    Full extent when dim <= cap.  Falls back to the full dim only if no aligned
    divisor exists (rare awkward shapes); never returns a non-dividing tile.
    """
    if dim <= cap:
        return dim
    start = cap - (cap % align)
    for t in range(start, 0, -align):
        if dim % t == 0:
            return t
    return dim


# ---------------------------------------------------------------------------
# Tiled Linear:  y = x @ W + b     x:(M,K)  W:(K,N)  b:(1,N)  y:(M,N)
# ---------------------------------------------------------------------------
def _linear_kernel(x_ref, w_ref, b_ref, o_ref, acc_ref):
    @pl.when(pl.program_id(2) == 0)
    def _():
        acc_ref[...] = jnp.zeros_like(acc_ref)

    acc_ref[...] += jnp.dot(x_ref[...], w_ref[...],
                            preferred_element_type=jnp.float32)

    @pl.when(pl.program_id(2) == pl.num_programs(2) - 1)
    def _():
        out = acc_ref[...] + b_ref[...].astype(jnp.float32)   # (1,tn) broadcasts
        o_ref[...] = out.astype(o_ref.dtype)


def linear(x2d, w, b, *, tm_cap=512, tn_cap=512, tk_cap=256):
    M, K = x2d.shape
    _, N = w.shape
    tm = _pick_tile(M, tm_cap, 8)      # sublane dims: multiple of 8
    tn = _pick_tile(N, tn_cap, 128)    # lane dims: multiple of 128 (or full)
    tk = _pick_tile(K, tk_cap, 128)
    grid = (M // tm, N // tn, K // tk)
    return pl.pallas_call(
        _linear_kernel,
        out_shape=jax.ShapeDtypeStruct((M, N), x2d.dtype),
        grid_spec=pltpu.PrefetchScalarGridSpec(
            num_scalar_prefetch=0,
            grid=grid,
            in_specs=[
                pl.BlockSpec((tm, tk), lambda i, j, k: (i, k)),   # x
                pl.BlockSpec((tk, tn), lambda i, j, k: (k, j)),   # W
                pl.BlockSpec((1, tn), lambda i, j, k: (0, j)),    # b
            ],
            out_specs=pl.BlockSpec((tm, tn), lambda i, j, k: (i, j)),
            scratch_shapes=[pltpu.VMEM((tm, tn), jnp.float32)],
        ),
        compiler_params=pltpu.CompilerParams(
            dimension_semantics=("parallel", "parallel", "arbitrary"),
            vmem_limit_bytes=_VMEM_LIMIT),
    )(x2d, w, b)


# ---------------------------------------------------------------------------
# Flash attention reading the fused qkv buffer directly.
#   qkv4 : (B*S, 3, H, dh)  (zero-copy view of in_proj output)
#   out  : (B*S, H, dh)
# Grid (B, n_q_blocks, n_kv_blocks); kv innermost (online softmax).
# ---------------------------------------------------------------------------
def _flash_kernel(q_ref, k_ref, v_ref, o_ref, m_sc, l_sc, acc_sc,
                  *, scale, causal, n_head, tq, tkv):
    i = pl.program_id(1)   # q-block index
    j = pl.program_id(2)   # kv-block index

    @pl.when(j == 0)
    def _():
        m_sc[...] = jnp.full_like(m_sc, _NEG_BIG)
        l_sc[...] = jnp.zeros_like(l_sc)
        acc_sc[...] = jnp.zeros_like(acc_sc)

    def compute():
        if causal:
            row = i * tq + jax.lax.broadcasted_iota(jnp.int32, (tq, tkv), 0)
            col = j * tkv + jax.lax.broadcasted_iota(jnp.int32, (tq, tkv), 1)
            causal_mask = col > row

        for h in range(n_head):                       # static unrolled head loop
            q = q_ref[:, h, :]                        # (tq, dh)  native dtype
            k = k_ref[:, h, :]                        # (tkv, dh) native dtype
            # q . k^T on the MXU without an explicit transpose or upcast;
            # accumulate in f32.
            s = jax.lax.dot_general(
                q, k, (((1,), (1,)), ((), ())),
                preferred_element_type=jnp.float32)   # (tq, tkv) f32
            s = s * scale                             # scale the f32 scores
            if causal:
                s = jnp.where(causal_mask, jnp.float32(_NEG_BIG), s)

            m_prev = m_sc[h]                                          # (tq, 1)
            m_new = jnp.maximum(m_prev, jnp.max(s, axis=-1, keepdims=True))
            alpha = jnp.exp(m_prev - m_new)
            p = jnp.exp(s - m_new)                                    # f32
            l_sc[h] = alpha * l_sc[h] + jnp.sum(p, axis=-1, keepdims=True)
            acc_sc[h] = alpha * acc_sc[h] + jnp.dot(
                p.astype(v_ref.dtype), v_ref[:, h, :],
                preferred_element_type=jnp.float32)
            m_sc[h] = m_new

    if causal:
        # Skip kv tiles entirely above the diagonal for this q tile.
        @pl.when(j * tkv <= i * tq + (tq - 1))
        def _():
            compute()
    else:
        compute()

    @pl.when(j == pl.num_programs(2) - 1)
    def _():
        for h in range(n_head):
            inv_l = pl.reciprocal(l_sc[h], approx=False)   # exact; once/q block
            o_ref[:, h, :] = (acc_sc[h] * inv_l).astype(o_ref.dtype)


def flash_attention(qkv, *, batch, seq, n_head, causal, tq_cap=256, tkv_cap=256):
    """qkv: (B*S, 3*D) fused in_proj output.  Returns (B*S, D)."""
    three_d = qkv.shape[-1]
    d_embed = three_d // 3
    dh = d_embed // n_head

    tq = _pick_tile(seq, tq_cap, 8)
    tkv = _pick_tile(seq, tkv_cap, 8)
    nq = seq // tq
    nkv = seq // tkv
    scale = 1.0 / math.sqrt(dh)

    # Zero-copy view: column order of qkv is [q | k | v], each head-major.
    qkv4 = qkv.reshape(batch * seq, 3, n_head, dh)

    if causal:
        def kv_row(b, i, j):
            # Clamp to the diagonal block: skipped iterations re-request the
            # already-resident block, so Pallas elides the K/V DMAs.
            jmax = (i * tq + tq - 1) // tkv
            return b * nkv + jnp.minimum(j, jmax)
    else:
        def kv_row(b, i, j):
            return b * nkv + j

    kernel = functools.partial(_flash_kernel, scale=scale, causal=bool(causal),
                               n_head=n_head, tq=tq, tkv=tkv)
    grid = (batch, nq, nkv)

    out = pl.pallas_call(
        kernel,
        out_shape=jax.ShapeDtypeStruct((batch * seq, n_head, dh), qkv.dtype),
        grid_spec=pltpu.PrefetchScalarGridSpec(
            num_scalar_prefetch=0,
            grid=grid,
            in_specs=[
                # q rows: third-axis index 0; resident across the kv axis.
                pl.BlockSpec((tq, None, n_head, dh),
                             lambda b, i, j: (b * nq + i, 0, 0, 0)),
                # k rows: third-axis index 1.
                pl.BlockSpec((tkv, None, n_head, dh),
                             lambda b, i, j: (kv_row(b, i, j), 1, 0, 0)),
                # v rows: third-axis index 2.
                pl.BlockSpec((tkv, None, n_head, dh),
                             lambda b, i, j: (kv_row(b, i, j), 2, 0, 0)),
            ],
            out_specs=pl.BlockSpec((tq, n_head, dh),
                                   lambda b, i, j: (b * nq + i, 0, 0)),
            scratch_shapes=[
                pltpu.VMEM((n_head, tq, 1), jnp.float32),    # running max m
                pltpu.VMEM((n_head, tq, 1), jnp.float32),    # running sum l
                pltpu.VMEM((n_head, tq, dh), jnp.float32),   # output accumulator
            ],
        ),
        compiler_params=pltpu.CompilerParams(
            dimension_semantics=("parallel", "parallel", "arbitrary"),
            vmem_limit_bytes=_VMEM_LIMIT),
    )(qkv4, qkv4, qkv4)

    return out.reshape(batch * seq, d_embed)   # free reshape, head-major columns


# ---------------------------------------------------------------------------
# Full module forward.
# ---------------------------------------------------------------------------
def self_attention(x, w_in, b_in, w_out, b_out, *, n_head, causal_mask=False):
    B, S, D = x.shape
    assert D % n_head == 0

    # in_proj: (B*S, D) @ (D, 3D) + b
    qkv = linear(x.reshape(B * S, D), w_in, b_in)                  # (B*S, 3D)

    # fused flash attention: reads qkv directly, writes (B*S, D) directly.
    attn = flash_attention(qkv, batch=B, seq=S, n_head=n_head,
                           causal=causal_mask)                     # (B*S, D)

    # out_proj: (B*S, D) @ (D, D) + b
    out = linear(attn, w_out, b_out)
    return out.reshape(B, S, D)


# ---------------------------------------------------------------------------
# Pure-JAX reference (standard scaled-dot-product multi-head attention --
# the *intended* semantics of the torch module, whose forward has typos).
# ---------------------------------------------------------------------------
def _reference(x, w_in, b_in, w_out, b_out, n_head, causal_mask=False):
    B, S, D = x.shape
    d_head = D // n_head
    qkv = x @ w_in + b_in[0]
    q, k, v = jnp.split(qkv, 3, axis=-1)

    def heads(t):
        return t.reshape(B, S, n_head, d_head).transpose(0, 2, 1, 3)

    q, k, v = heads(q), heads(k), heads(v)
    w = jnp.einsum('bhqd,bhkd->bhqk', q, k) / math.sqrt(d_head)
    if causal_mask:
        mask = jnp.triu(jnp.ones((S, S), bool), 1)
        w = jnp.where(mask, -jnp.inf, w)
    w = jax.nn.softmax(w, axis=-1)
    o = jnp.einsum('bhqk,bhkd->bhqd', w, v)
    o = o.transpose(0, 2, 1, 3).reshape(B, S, D)
    return o @ w_out + b_out[0]


if __name__ == "__main__":
    B, S, D, H = 2, 8, 32, 4

    key = jax.random.PRNGKey(0)
    kx, k1, k2, k3, k4 = jax.random.split(key, 5)

    x = jax.random.normal(kx, (B, S, D), dtype=jnp.float32)

    # Deterministic synthetic parameters (stored (in_features, out_features)
    # so the kernel computes x @ W + b, matching torch Linear's math).
    bound_in = 1.0 / math.sqrt(D)
    w_in = jax.random.uniform(k1, (D, 3 * D), jnp.float32, -bound_in, bound_in)
    b_in = jax.random.uniform(k2, (1, 3 * D), jnp.float32, -bound_in, bound_in)
    w_out = jax.random.uniform(k3, (D, D), jnp.float32, -bound_in, bound_in)
    b_out = jax.random.uniform(k4, (1, D), jnp.float32, -bound_in, bound_in)

    # Non-causal path.
    out = self_attention(x, w_in, b_in, w_out, b_out,
                         n_head=H, causal_mask=False)
    jax.block_until_ready(out)
    ref = _reference(x, w_in, b_in, w_out, b_out, H, causal_mask=False)
    assert jnp.allclose(out, ref, atol=5e-3, rtol=5e-3), "mismatch vs reference"

    # Causal path.
    out_c = self_attention(x, w_in, b_in, w_out, b_out,
                           n_head=H, causal_mask=True)
    jax.block_until_ready(out_c)
    ref_c = _reference(x, w_in, b_in, w_out, b_out, H, causal_mask=True)
    assert jnp.allclose(out_c, ref_c, atol=5e-3, rtol=5e-3), "causal mismatch"

    print("KERNEL_OK")
</pallas_src>

<mosaic_0001>
module attributes {stable_mosaic.version = 11 : i64} {
  func.func @_linear_kernel(%arg0: i32, %arg1: i32, %arg2: i32, %arg3: memref<16x32xf32, #tpu.memory_space<vmem>>, %arg4: memref<32x96xf32, #tpu.memory_space<vmem>>, %arg5: memref<1x96xf32, #tpu.memory_space<vmem>>, %arg6: memref<16x96xf32, #tpu.memory_space<vmem>>, %arg7: memref<16x96xf32, #tpu.memory_space<vmem>>) attributes {dimension_semantics = [#tpu.dimension_semantics<parallel>, #tpu.dimension_semantics<parallel>, #tpu.dimension_semantics<arbitrary>], iteration_bounds = array<i64: 1, 1, 1>, scalar_prefetch = 0 : i64, scratch_operands = 1 : i64, tpu.core_type = #tpu.core_type<tc>, window_params = [{transform_indices = @transform_0, window_bounds = array<i64: 16, 32>}, {transform_indices = @transform_1, window_bounds = array<i64: 32, 96>}, {transform_indices = @transform_2, window_bounds = array<i64: 1, 96>}, {transform_indices = @transform_3, window_bounds = array<i64: 16, 96>}]} {
    %c0_i32 = arith.constant 0 : i32
    %0 = arith.cmpi eq, %arg2, %c0_i32 : i32
    %1 = arith.extui %0 : i1 to i32
    %c0_i32_0 = arith.constant 0 : i32
    %2 = arith.cmpi ne, %1, %c0_i32_0 : i32
    scf.if %2 {
      %cst_10 = arith.constant 0.000000e+00 : f32
      %12 = vector.broadcast %cst_10 : f32 to vector<16x96xf32>
      %c0_11 = arith.constant 0 : index
      %c0_12 = arith.constant 0 : index
      %13 = vector.load %arg7[%c0_11, %c0_12] : memref<16x96xf32, #tpu.memory_space<vmem>>, vector<16x96xf32>
      tpu.vector_store %arg7[%c0_11, %c0_12], %12 {strides = array<i32>} : memref<16x96xf32, #tpu.memory_space<vmem>>, vector<16x96xf32>,
    } else {
    }
    %c0 = arith.constant 0 : index
    %c0_1 = arith.constant 0 : index
    %3 = vector.load %arg7[%c0, %c0_1] : memref<16x96xf32, #tpu.memory_space<vmem>>, vector<16x96xf32>
    %c0_2 = arith.constant 0 : index
    %c0_3 = arith.constant 0 : index
    %4 = vector.load %arg3[%c0_2, %c0_3] : memref<16x32xf32, #tpu.memory_space<vmem>>, vector<16x32xf32>
    %c0_4 = arith.constant 0 : index
    %c0_5 = arith.constant 0 : index
    %5 = vector.load %arg4[%c0_4, %c0_5] : memref<32x96xf32, #tpu.memory_space<vmem>>, vector<32x96xf32>
    %cst = arith.constant dense<0.000000e+00> : vector<16x96xf32>
    %6 = tpu.matmul %4, %5, %cst {dimension_numbers = #tpu.dot_dimension_numbers<[1], [0], [0], [1], [0, 0, 1, 1], [], []>} : vector<16x32xf32>, vector<32x96xf32>, vector<16x96xf32> -> vector<16x96xf32>
    %7 = arith.addf %3, %6 : vector<16x96xf32>
    %c0_6 = arith.constant 0 : index
    %c0_7 = arith.constant 0 : index
    %8 = vector.load %arg7[%c0_6, %c0_7] : memref<16x96xf32, #tpu.memory_space<vmem>>, vector<16x96xf32>
    tpu.vector_store %arg7[%c0_6, %c0_7], %7 {strides = array<i32>} : memref<16x96xf32, #tpu.memory_space<vmem>>, vector<16x96xf32>,
    %c0_i32_8 = arith.constant 0 : i32
    %9 = arith.cmpi eq, %arg2, %c0_i32_8 : i32
    %10 = arith.extui %9 : i1 to i32
    %c0_i32_9 = arith.constant 0 : i32
    %11 = arith.cmpi ne, %10, %c0_i32_9 : i32
    scf.if %11 {
      %c0_10 = arith.constant 0 : index
      %c0_11 = arith.constant 0 : index
      %12 = vector.load %arg7[%c0_10, %c0_11] : memref<16x96xf32, #tpu.memory_space<vmem>>, vector<16x96xf32>
      %c0_12 = arith.constant 0 : index
      %c0_13 = arith.constant 0 : index
      %13 = vector.load %arg5[%c0_12, %c0_13] : memref<1x96xf32, #tpu.memory_space<vmem>>, vector<1x96xf32>
      %14 = vector.broadcast %13 : vector<1x96xf32> to vector<16x96xf32>
      %15 = arith.addf %12, %14 : vector<16x96xf32>
      %c0_14 = arith.constant 0 : index
      %c0_15 = arith.constant 0 : index
      %16 = vector.load %arg6[%c0_14, %c0_15] : memref<16x96xf32, #tpu.memory_space<vmem>>, vector<16x96xf32>
      tpu.vector_store %arg6[%c0_14, %c0_15], %15 {strides = array<i32>} : memref<16x96xf32, #tpu.memory_space<vmem>>, vector<16x96xf32>,
    } else {
    }
    return
  }
  func.func @transform_0(%arg0: i32, %arg1: i32, %arg2: i32) -> (i32, i32) {
    %c0_i32 = arith.constant 0 : i32
    return %arg0, %arg2 : i32, i32
  }
  func.func @transform_1(%arg0: i32, %arg1: i32, %arg2: i32) -> (i32, i32) {
    %c0_i32 = arith.constant 0 : i32
    return %arg2, %arg1 : i32, i32
  }
  func.func @transform_2(%arg0: i32, %arg1: i32, %arg2: i32) -> (i32, i32) {
    %c0_i32 = arith.constant 0 : i32
    %c0_i32_0 = arith.constant 0 : i32
    return %c0_i32, %arg1 : i32, i32
  }
  func.func @transform_3(%arg0: i32, %arg1: i32, %arg2: i32) -> (i32, i32) {
    %c0_i32 = arith.constant 0 : i32
    return %arg0, %arg1 : i32, i32
  }
}

</mosaic_0001>

<bundles_post_ra>
// kernel: tpu_custom_call.1
= control target key start
LH: loop header
LB: loop body
LE: loop exit
PB: predicated region body
PF: predicated region fallthrough
CT: control target
= control target key end

     0   :  { %8 = vsyncpa [#allocation4], 0  ;;  %s274_s0 = inlined_call_operand.hbm [shape: f32[16,32], index: 0, kind: input, shape index: {}]   ;;  %s275_s1 = inlined_call_operand.hbm [shape: f32[32,96], index: 1, kind: input, shape index: {}]   ;;  %s276_s2 = inlined_call_operand.vmem [shape: f32[1,96], index: 2, kind: input, shape index: {}]   ;;  %s277_s3 = inlined_call_operand.hbm [shape: f32[16,96], index: 3, kind: output, shape index: {}]  }
   0x1   :  { %9 = vsyncpa [#allocation7], 0 }
   0x2   :  { %10 = vsyncpa [#allocation5], 0  ;;  %s15_s14 = sshll.u32 %s274_s0, 4  ;;  %s221_s15 = smov [#allocation3]   ;;  %s16_s14 = int_to_ptr.hbm [resolvable:$true] %s15_s14 }
   0x3   :  { %s17_s16 = sshll.u32 %s221_s15, 4  ;;  %s28_s19 = sshll.u32 %s275_s1, 4  ;;  %s18_s16 = int_to_ptr.vmem [resolvable:$true] %s17_s16  ;;  %s29_s19 = int_to_ptr.hbm [resolvable:$true] %s28_s19 }
   0x4   :  { %s222_s20 = smov 128   ;;  %s223_s21 = smov 8  }
   0x5   :  { %23 = dma.hbm_to_vmem [thread:$0]  %s16_s14, 256, %s18_s16, [#allocation4], %s222_s20, %s222_s20, %s223_s21  }
   0x6   :  { %s224_s22 = smov [#allocation6]  }
   0x7   :  { %s30_s23 = sshll.u32 %s224_s22, 4  ;;  %s31_s23 = int_to_ptr.vmem [resolvable:$true] %s30_s23 }
   0x8   :  { %36 = dma.hbm_to_vmem [thread:$0]  %s29_s19, 512, %s31_s23, [#allocation7], %s222_s20, %s222_s20, %s223_s21  }
   0x9   :  { %215 = dma.done.wait [#allocation4], 256  }
   0xa   :  { %216 = vsyncadd [#allocation4], 4294967040 }
   0xb   :  { %217 = dma.done.wait [#allocation7], 512  }
   0xc   :  { %218 = vsyncadd [#allocation7], 4294966784  ;;  %vm51_vm0 = vcmask 785408   ;;  %v225_v0 = vmov 0.0   ;;  %v61_v1 = vld [vmem:[#allocation6 + $0x18] sm:$0xff]  ;;  %v60_v2 = vld [vmem:[#allocation6 + $0x10] sm:$0xff] }
   0xd   :  { %52 = vst.msk [vmem:[#allocation2] sm:$0xff] %vm51_vm0, %v225_v0  ;;  %81 = vmatpush.msra.mxu0 %v61_v1  ;;  %132 = vmatpush.msra.mxu1 %v61_v1  ;;  %v59_v3 = vld [vmem:[#allocation6 + $0x8] sm:$0xff]  ;;  %v58_v4 = vld [vmem:[#allocation6] sm:$0xff]  ;;  %v56_v5 = vld [vmem:[#allocation3] sm:$0xff]  ;;  %vm62_vm1 = vcmask 261120   ;;  %s226_s24 = smov [#allocation8]  }
   0xe   :  { %53 = vst.msk [vmem:[#allocation2 + $0x8] sm:$0xff] %vm51_vm0, %v225_v0  ;;  %v57_v6 = vld [vmem:[#allocation3 + $0x8] sm:$0xff]  ;;  %v142_v13 = vld [vmem:[%s276_s2] ss:$0 sm:$0xff]  ;;  %s114_s25 = sshll.u32 %s226_s24, 4  ;;  %s116_s28 = sshll.u32 %s277_s3, 4  ;;  %s115_s25 = int_to_ptr.vmem [resolvable:$true] %s114_s25  ;;  %s117_s28 = int_to_ptr.hbm [resolvable:$true] %s116_s28 }
   0xf   :  { %82 = vmatpush.msra.mxu0 %v60_v2  ;;  %133 = vmatpush.msra.mxu1 %v60_v2 }
  0x11   :  { %83 = vmatpush.msra.mxu0 %v59_v3  ;;  %134 = vmatpush.msra.mxu1 %v59_v3 }
  0x13   :  { %84 = vmatpush.msra.mxu0 %v58_v4  ;;  %135 = vmatpush.msra.mxu1 %v58_v4 }
  0x14   :  { %130 = vmatmul.msk.f32.vlgmr.msra.gmra.mxu0 %vm62_vm1, %v56_v5  ;;  %131 = vmatmul.msk.f32.vlgmr.msra.gmra.mxu1 %vm62_vm1, %v57_v6  ;;  %v54_v7 = vld [vmem:[#allocation2] sm:$0xff] }
  0x15   :  { %v55_v8 = vld [vmem:[#allocation2 + $0x8] sm:$0xff] }
  0x91   :  { %v86_v9 = vpop.f32.mrf.mxu0  ;;  %v89_v10 = vpop.f32.mrf.mxu1 }
  0x92   :  { %v92_v11 = vadd.f32 %v86_v9, %v54_v7  ;;  %v93_v12 = vadd.f32 %v89_v10, %v55_v8 }
  0x94   :  { %95 = vst.msk [vmem:[#allocation2] sm:$0xff] %vm51_vm0, %v92_v11 }
  0x95   :  { %96 = vst.msk [vmem:[#allocation2 + $0x8] sm:$0xff] %vm51_vm0, %v93_v12 }
  0x9b   :  { %v100_v14 = vld [vmem:[#allocation2] sm:$0xff] }
  0x9c   :  { %v101_v15 = vld [vmem:[#allocation2 + $0x8] sm:$0xff]  ;;  %v106_v16 = vadd.f32 %v142_v13, %v100_v14 }
  0x9d   :  { %v107_v17 = vadd.f32 %v142_v13, %v101_v15 }
  0x9e   :  { %108 = vst.msk [vmem:[#allocation8] sm:$0xff] %vm51_vm0, %v106_v16 }
  0x9f   :  { %109 = vst.msk [vmem:[#allocation8 + $0x8] sm:$0xff] %vm51_vm0, %v107_v17 }
  0xa0   :  { %122 = dma.vmem_to_hbm [thread:$0]  %s115_s25, 256, %s117_s28, [#allocation5], %s222_s20, %s222_s20, %s223_s21  }
  0xa1   :  { %219 = dma.done.wait [#allocation5], 256  }
  0xa2   :  { %220 = vsyncadd [#allocation5], 4294967040 }
  0xa3   :  { %127 = vsyncpa [#allocation4], 1 }
  0xa4   :  { %128 = vsyncpa [#allocation7], 1 }
  0xa5   :  { %129 = vsyncpa [#allocation5], 1 }

</bundles_post_ra>
